<compile_context>
chip_gen: v6e
topology: v6e:2x2x1
jax: 0.10.0
libtpu: 0.0.40
codegen_flags: <defaults>
</compile_context>

<pallas_src>
import functools

import jax
import jax.numpy as jnp
import numpy as np
from jax import lax
from jax.experimental import pallas as pl
from jax.experimental.pallas import tpu as pltpu


# ------------------------------ fused kernel --------------------------------
def _dlkcb_fused_kernel(x_ref, w1_ref, b1_ref, wdw_ref, bdw_ref,
                        wdwd_ref, bdwd_ref, w2_ref, b2_ref, o_ref,
                        *, Wp, L1, L2, d1, d2):
    # x_ref : (1, Cin, S)   reflection-padded input, spatial flattened (S=Hp*Wp)
    # w1    : (Cin, Cin)    conv1 weight [out, in]
    # wdw   : (Cin, 9)      depthwise taps, tap k = dy*3+dx
    # w2    : (Cout, Cin)   conv2 weight [out, in]
    # biases: (C, 1)
    # o_ref : (1, Cout, OUT_S) lane-dense output slab (valid prefix = L2 cols)
    Cin = x_ref.shape[1]
    Cout, out_s = o_ref.shape[1], o_ref.shape[2]

    x = x_ref[0]                                                    # (Cin, S)

    # conv1: 1x1 pointwise on the MXU (lane dim = Hp*Wp, lane-dense)
    y1 = jnp.dot(w1_ref[...], x, preferred_element_type=jnp.float32) + b1_ref[...]

    # depthwise 3x3, dilation d1: taps = static lane-offset slices (flat layout)
    wdw = wdw_ref[...]
    acc1 = jnp.zeros((Cin, L1), jnp.float32)
    for dy in range(3):
        for dx in range(3):
            k = dy * 3 + dx
            off = d1 * (dy * Wp + dx)
            acc1 = acc1 + wdw[:, k:k + 1] * y1[:, off:off + L1]
    acc1 = acc1 + bdw_ref[...]

    # depthwise 3x3, dilation d2
    wdwd = wdwd_ref[...]
    acc2 = jnp.zeros((Cin, L2), jnp.float32)
    for dy in range(3):
        for dx in range(3):
            k = dy * 3 + dx
            off = d2 * (dy * Wp + dx)
            acc2 = acc2 + wdwd[:, k:k + 1] * acc1[:, off:off + L2]
    acc2 = acc2 + bdwd_ref[...]

    # conv2: 1x1 pointwise to out_feat on the MXU (lane-dense output)
    out = jnp.dot(w2_ref[...], acc2, preferred_element_type=jnp.float32) + b2_ref[...]

    o_ref[0, :, :L2] = out.astype(o_ref.dtype)
    o_ref[0, :, L2:] = jnp.zeros((Cout, out_s - L2), o_ref.dtype)


# ------------------------------- DLKCB forward -------------------------------
def dlkcb_forward(x_nchw, params, *, kernel=3, pad=0):
    N, Cin, H, W = x_nchw.shape
    Cout = params["w2"].shape[0]
    d1, d2 = 1, kernel
    Hp, Wp = H + 2 * pad, W + 2 * pad
    S = Hp * Wp
    shrink = 2 * (d1 + d2)                       # spatial shrink of the two dw convs
    Hout, Wout = Hp - shrink, Wp - shrink
    L1 = S - 2 * d1 * Wp - 2 * d1                # valid flat prefix after dwconv
    L2 = L1 - 2 * d2 * Wp - 2 * d2               # valid flat prefix after dwdconv
    out_s = Hout * Wp                            # lane-dense output slab width
    assert L2 == (Hout - 1) * Wp + Wout          # all valid output pixels covered

    # ReflectionPad2d commutes with the pointwise conv1, so pad the raw input
    # once (cheap XLA op) and fuse conv1 -> dw -> dwd -> conv2 into ONE kernel.
    xp = jnp.pad(x_nchw, ((0, 0), (0, 0), (pad, pad), (pad, pad)), mode="reflect")
    xf = xp.reshape(N, Cin, S)

    kern = functools.partial(_dlkcb_fused_kernel, Wp=Wp, L1=L1, L2=L2, d1=d1, d2=d2)
    out_flat = pl.pallas_call(
        kern,
        out_shape=jax.ShapeDtypeStruct((N, Cout, out_s), x_nchw.dtype),
        grid=(N,),
        in_specs=[
            pl.BlockSpec((1, Cin, S), lambda n: (n, 0, 0)),      # activations
            pl.BlockSpec((Cin, Cin), lambda n: (0, 0)),          # w1 (resident)
            pl.BlockSpec((Cin, 1), lambda n: (0, 0)),            # b1
            pl.BlockSpec((Cin, 9), lambda n: (0, 0)),            # w_dw
            pl.BlockSpec((Cin, 1), lambda n: (0, 0)),            # b_dw
            pl.BlockSpec((Cin, 9), lambda n: (0, 0)),            # w_dwd
            pl.BlockSpec((Cin, 1), lambda n: (0, 0)),            # b_dwd
            pl.BlockSpec((Cout, Cin), lambda n: (0, 0)),         # w2
            pl.BlockSpec((Cout, 1), lambda n: (0, 0)),           # b2
        ],
        out_specs=pl.BlockSpec((1, Cout, out_s), lambda n: (n, 0, 0)),
        compiler_params=pltpu.CompilerParams(
            dimension_semantics=("parallel",),
            vmem_limit_bytes=32 * 1024 * 1024,
        ),
    )(xf, params["w1"], params["b1"], params["wdw"], params["bdw"],
      params["wdwd"], params["bdwd"], params["w2"], params["b2"])

    # crop the row-major valid prefix back to NCHW (tiny XLA slice)
    out = out_flat.reshape(N, Cout, Hout, Wp)[:, :, :, :Wout]
    return out


# ------------------------------ plain-JAX reference --------------------------
def dlkcb_reference(x_nchw, params, *, kernel=3, pad=0):
    Cin = params["w1"].shape[0]
    dn = ("NCHW", "OIHW", "NCHW")

    w1 = params["w1"][:, :, None, None]                           # (Cin, Cin, 1, 1)
    x = lax.conv_general_dilated(x_nchw, w1, (1, 1), "VALID", dimension_numbers=dn)
    x = x + params["b1"][:, 0][None, :, None, None]

    x = jnp.pad(x, ((0, 0), (0, 0), (pad, pad), (pad, pad)), mode="reflect")

    w_dw = params["wdw"].reshape(Cin, 1, 3, 3)
    x = lax.conv_general_dilated(x, w_dw, (1, 1), "VALID",
                                 feature_group_count=Cin, dimension_numbers=dn)
    x = x + params["bdw"][:, 0][None, :, None, None]

    w_dwd = params["wdwd"].reshape(Cin, 1, 3, 3)
    x = lax.conv_general_dilated(x, w_dwd, (1, 1), "VALID",
                                 rhs_dilation=(kernel, kernel),
                                 feature_group_count=Cin, dimension_numbers=dn)
    x = x + params["bdwd"][:, 0][None, :, None, None]

    w2 = params["w2"][:, :, None, None]                           # (Cout, Cin, 1, 1)
    x = lax.conv_general_dilated(x, w2, (1, 1), "VALID", dimension_numbers=dn)
    x = x + params["b2"][:, 0][None, :, None, None]
    return x


# ----------------------------------- main ------------------------------------
if __name__ == "__main__":
    N, in_feat, out_feat, H, W = 2, 4, 8, 16, 16
    kernel_size, pad = 3, 4   # pad=4 exactly compensates the 2+6 shrink of the dw convs

    key = jax.random.PRNGKey(0)
    ks = jax.random.split(key, 9)
    params = {
        "w1":   0.1 * jax.random.normal(ks[0], (in_feat, in_feat), jnp.float32),
        "b1":   0.1 * jax.random.normal(ks[1], (in_feat, 1), jnp.float32),
        "wdw":  0.1 * jax.random.normal(ks[2], (in_feat, 9), jnp.float32),
        "bdw":  0.1 * jax.random.normal(ks[3], (in_feat, 1), jnp.float32),
        "wdwd": 0.1 * jax.random.normal(ks[4], (in_feat, 9), jnp.float32),
        "bdwd": 0.1 * jax.random.normal(ks[5], (in_feat, 1), jnp.float32),
        "w2":   0.1 * jax.random.normal(ks[6], (out_feat, in_feat), jnp.float32),
        "b2":   0.1 * jax.random.normal(ks[7], (out_feat, 1), jnp.float32),
    }
    x = jax.random.normal(ks[8], (N, in_feat, H, W), jnp.float32)

    fwd = jax.jit(functools.partial(dlkcb_forward, kernel=kernel_size, pad=pad))
    out = jax.block_until_ready(fwd(x, params))
    ref = jax.block_until_ready(dlkcb_reference(x, params, kernel=kernel_size, pad=pad))

    assert out.shape == (N, out_feat, H, W), out.shape
    np.testing.assert_allclose(np.asarray(out), np.asarray(ref), rtol=1e-4, atol=1e-4)
    print("KERNEL_OK")
</pallas_src>

<mosaic_0001>
module attributes {stable_mosaic.version = 11 : i64} {
  func.func @_dlkcb_fused_kernel(%arg0: i32, %arg1: memref<1x4x576xf32, #tpu.memory_space<vmem>>, %arg2: memref<4x4xf32, #tpu.memory_space<vmem>>, %arg3: memref<4x1xf32, #tpu.memory_space<vmem>>, %arg4: memref<4x9xf32, #tpu.memory_space<vmem>>, %arg5: memref<4x1xf32, #tpu.memory_space<vmem>>, %arg6: memref<4x9xf32, #tpu.memory_space<vmem>>, %arg7: memref<4x1xf32, #tpu.memory_space<vmem>>, %arg8: memref<8x4xf32, #tpu.memory_space<vmem>>, %arg9: memref<8x1xf32, #tpu.memory_space<vmem>>, %arg10: memref<1x8x384xf32, #tpu.memory_space<vmem>>) attributes {dimension_semantics = [#tpu.dimension_semantics<parallel>], iteration_bounds = array<i64: 2>, scalar_prefetch = 0 : i64, scratch_operands = 0 : i64, tpu.core_type = #tpu.core_type<tc>, window_params = [{transform_indices = @transform_0, window_bounds = array<i64: 1, 4, 576>}, {pipeline_mode = #tpu.pipeline_mode<synchronous>, transform_indices = @transform_1, window_bounds = array<i64: 4, 4>}, {pipeline_mode = #tpu.pipeline_mode<synchronous>, transform_indices = @transform_2, window_bounds = array<i64: 4, 1>}, {pipeline_mode = #tpu.pipeline_mode<synchronous>, transform_indices = @transform_3, window_bounds = array<i64: 4, 9>}, {pipeline_mode = #tpu.pipeline_mode<synchronous>, transform_indices = @transform_4, window_bounds = array<i64: 4, 1>}, {pipeline_mode = #tpu.pipeline_mode<synchronous>, transform_indices = @transform_5, window_bounds = array<i64: 4, 9>}, {pipeline_mode = #tpu.pipeline_mode<synchronous>, transform_indices = @transform_6, window_bounds = array<i64: 4, 1>}, {pipeline_mode = #tpu.pipeline_mode<synchronous>, transform_indices = @transform_7, window_bounds = array<i64: 8, 4>}, {pipeline_mode = #tpu.pipeline_mode<synchronous>, transform_indices = @transform_8, window_bounds = array<i64: 8, 1>}, {transform_indices = @transform_9, window_bounds = array<i64: 1, 8, 384>}]} {
    %c0 = arith.constant 0 : index
    %c0_0 = arith.constant 0 : index
    %c0_1 = arith.constant 0 : index
    %0 = vector.load %arg1[%c0, %c0_0, %c0_1] : memref<1x4x576xf32, #tpu.memory_space<vmem>>, vector<1x4x576xf32>
    %1 = vector.shape_cast %0 : vector<1x4x576xf32> to vector<4x576xf32>
    %c0_2 = arith.constant 0 : index
    %c0_3 = arith.constant 0 : index
    %2 = vector.load %arg2[%c0_2, %c0_3] : memref<4x4xf32, #tpu.memory_space<vmem>>, vector<4x4xf32>
    %cst = arith.constant dense<0.000000e+00> : vector<4x576xf32>
    %3 = tpu.matmul %2, %1, %cst {dimension_numbers = #tpu.dot_dimension_numbers<[1], [0], [0], [1], [0, 0, 1, 1], [], []>} : vector<4x4xf32>, vector<4x576xf32>, vector<4x576xf32> -> vector<4x576xf32>
    %c0_4 = arith.constant 0 : index
    %c0_5 = arith.constant 0 : index
    %4 = vector.load %arg3[%c0_4, %c0_5] : memref<4x1xf32, #tpu.memory_space<vmem>>, vector<4x1xf32>
    %5 = vector.broadcast %4 : vector<4x1xf32> to vector<4x576xf32>
    %6 = arith.addf %3, %5 : vector<4x576xf32>
    %c0_6 = arith.constant 0 : index
    %c0_7 = arith.constant 0 : index
    %7 = vector.load %arg4[%c0_6, %c0_7] : memref<4x9xf32, #tpu.memory_space<vmem>>, vector<4x9xf32>
    %cst_8 = arith.constant 0.000000e+00 : f32
    %8 = vector.broadcast %cst_8 : f32 to vector<4x526xf32>
    %9 = vector.extract_strided_slice %7 {offsets = [0, 0], sizes = [4, 1], strides = [1, 1]} : vector<4x9xf32> to vector<4x1xf32>
    %10 = vector.extract_strided_slice %6 {offsets = [0, 0], sizes = [4, 526], strides = [1, 1]} : vector<4x576xf32> to vector<4x526xf32>
    %11 = vector.broadcast %9 : vector<4x1xf32> to vector<4x526xf32>
    %12 = arith.mulf %11, %10 : vector<4x526xf32>
    %13 = arith.addf %8, %12 : vector<4x526xf32>
    %14 = vector.extract_strided_slice %7 {offsets = [0, 1], sizes = [4, 1], strides = [1, 1]} : vector<4x9xf32> to vector<4x1xf32>
    %15 = vector.extract_strided_slice %6 {offsets = [0, 1], sizes = [4, 526], strides = [1, 1]} : vector<4x576xf32> to vector<4x526xf32>
    %16 = vector.broadcast %14 : vector<4x1xf32> to vector<4x526xf32>
    %17 = arith.mulf %16, %15 : vector<4x526xf32>
    %18 = arith.addf %13, %17 : vector<4x526xf32>
    %19 = vector.extract_strided_slice %7 {offsets = [0, 2], sizes = [4, 1], strides = [1, 1]} : vector<4x9xf32> to vector<4x1xf32>
    %20 = vector.extract_strided_slice %6 {offsets = [0, 2], sizes = [4, 526], strides = [1, 1]} : vector<4x576xf32> to vector<4x526xf32>
    %21 = vector.broadcast %19 : vector<4x1xf32> to vector<4x526xf32>
    %22 = arith.mulf %21, %20 : vector<4x526xf32>
    %23 = arith.addf %18, %22 : vector<4x526xf32>
    %24 = vector.extract_strided_slice %7 {offsets = [0, 3], sizes = [4, 1], strides = [1, 1]} : vector<4x9xf32> to vector<4x1xf32>
    %25 = vector.extract_strided_slice %6 {offsets = [0, 24], sizes = [4, 526], strides = [1, 1]} : vector<4x576xf32> to vector<4x526xf32>
    %26 = vector.broadcast %24 : vector<4x1xf32> to vector<4x526xf32>
    %27 = arith.mulf %26, %25 : vector<4x526xf32>
    %28 = arith.addf %23, %27 : vector<4x526xf32>
    %29 = vector.extract_strided_slice %7 {offsets = [0, 4], sizes = [4, 1], strides = [1, 1]} : vector<4x9xf32> to vector<4x1xf32>
    %30 = vector.extract_strided_slice %6 {offsets = [0, 25], sizes = [4, 526], strides = [1, 1]} : vector<4x576xf32> to vector<4x526xf32>
    %31 = vector.broadcast %29 : vector<4x1xf32> to vector<4x526xf32>
    %32 = arith.mulf %31, %30 : vector<4x526xf32>
    %33 = arith.addf %28, %32 : vector<4x526xf32>
    %34 = vector.extract_strided_slice %7 {offsets = [0, 5], sizes = [4, 1], strides = [1, 1]} : vector<4x9xf32> to vector<4x1xf32>
    %35 = vector.extract_strided_slice %6 {offsets = [0, 26], sizes = [4, 526], strides = [1, 1]} : vector<4x576xf32> to vector<4x526xf32>
    %36 = vector.broadcast %34 : vector<4x1xf32> to vector<4x526xf32>
    %37 = arith.mulf %36, %35 : vector<4x526xf32>
    %38 = arith.addf %33, %37 : vector<4x526xf32>
    %39 = vector.extract_strided_slice %7 {offsets = [0, 6], sizes = [4, 1], strides = [1, 1]} : vector<4x9xf32> to vector<4x1xf32>
    %40 = vector.extract_strided_slice %6 {offsets = [0, 48], sizes = [4, 526], strides = [1, 1]} : vector<4x576xf32> to vector<4x526xf32>
    %41 = vector.broadcast %39 : vector<4x1xf32> to vector<4x526xf32>
    %42 = arith.mulf %41, %40 : vector<4x526xf32>
    %43 = arith.addf %38, %42 : vector<4x526xf32>
    %44 = vector.extract_strided_slice %7 {offsets = [0, 7], sizes = [4, 1], strides = [1, 1]} : vector<4x9xf32> to vector<4x1xf32>
    %45 = vector.extract_strided_slice %6 {offsets = [0, 49], sizes = [4, 526], strides = [1, 1]} : vector<4x576xf32> to vector<4x526xf32>
    %46 = vector.broadcast %44 : vector<4x1xf32> to vector<4x526xf32>
    %47 = arith.mulf %46, %45 : vector<4x526xf32>
    %48 = arith.addf %43, %47 : vector<4x526xf32>
    %49 = vector.extract_strided_slice %7 {offsets = [0, 8], sizes = [4, 1], strides = [1, 1]} : vector<4x9xf32> to vector<4x1xf32>
    %50 = vector.extract_strided_slice %6 {offsets = [0, 50], sizes = [4, 526], strides = [1, 1]} : vector<4x576xf32> to vector<4x526xf32>
    %51 = vector.broadcast %49 : vector<4x1xf32> to vector<4x526xf32>
    %52 = arith.mulf %51, %50 : vector<4x526xf32>
    %53 = arith.addf %48, %52 : vector<4x526xf32>
    %c0_9 = arith.constant 0 : index
    %c0_10 = arith.constant 0 : index
    %54 = vector.load %arg5[%c0_9, %c0_10] : memref<4x1xf32, #tpu.memory_space<vmem>>, vector<4x1xf32>
    %55 = vector.broadcast %54 : vector<4x1xf32> to vector<4x526xf32>
    %56 = arith.addf %53, %55 : vector<4x526xf32>
    %c0_11 = arith.constant 0 : index
    %c0_12 = arith.constant 0 : index
    %57 = vector.load %arg6[%c0_11, %c0_12] : memref<4x9xf32, #tpu.memory_space<vmem>>, vector<4x9xf32>
    %cst_13 = arith.constant 0.000000e+00 : f32
    %58 = vector.broadcast %cst_13 : f32 to vector<4x376xf32>
    %59 = vector.extract_strided_slice %57 {offsets = [0, 0], sizes = [4, 1], strides = [1, 1]} : vector<4x9xf32> to vector<4x1xf32>
    %60 = vector.extract_strided_slice %56 {offsets = [0, 0], sizes = [4, 376], strides = [1, 1]} : vector<4x526xf32> to vector<4x376xf32>
    %61 = vector.broadcast %59 : vector<4x1xf32> to vector<4x376xf32>
    %62 = arith.mulf %61, %60 : vector<4x376xf32>
    %63 = arith.addf %58, %62 : vector<4x376xf32>
    %64 = vector.extract_strided_slice %57 {offsets = [0, 1], sizes = [4, 1], strides = [1, 1]} : vector<4x9xf32> to vector<4x1xf32>
    %65 = vector.extract_strided_slice %56 {offsets = [0, 3], sizes = [4, 376], strides = [1, 1]} : vector<4x526xf32> to vector<4x376xf32>
    %66 = vector.broadcast %64 : vector<4x1xf32> to vector<4x376xf32>
    %67 = arith.mulf %66, %65 : vector<4x376xf32>
    %68 = arith.addf %63, %67 : vector<4x376xf32>
    %69 = vector.extract_strided_slice %57 {offsets = [0, 2], sizes = [4, 1], strides = [1, 1]} : vector<4x9xf32> to vector<4x1xf32>
    %70 = vector.extract_strided_slice %56 {offsets = [0, 6], sizes = [4, 376], strides = [1, 1]} : vector<4x526xf32> to vector<4x376xf32>
    %71 = vector.broadcast %69 : vector<4x1xf32> to vector<4x376xf32>
    %72 = arith.mulf %71, %70 : vector<4x376xf32>
    %73 = arith.addf %68, %72 : vector<4x376xf32>
    %74 = vector.extract_strided_slice %57 {offsets = [0, 3], sizes = [4, 1], strides = [1, 1]} : vector<4x9xf32> to vector<4x1xf32>
    %75 = vector.extract_strided_slice %56 {offsets = [0, 72], sizes = [4, 376], strides = [1, 1]} : vector<4x526xf32> to vector<4x376xf32>
    %76 = vector.broadcast %74 : vector<4x1xf32> to vector<4x376xf32>
    %77 = arith.mulf %76, %75 : vector<4x376xf32>
    %78 = arith.addf %73, %77 : vector<4x376xf32>
    %79 = vector.extract_strided_slice %57 {offsets = [0, 4], sizes = [4, 1], strides = [1, 1]} : vector<4x9xf32> to vector<4x1xf32>
    %80 = vector.extract_strided_slice %56 {offsets = [0, 75], sizes = [4, 376], strides = [1, 1]} : vector<4x526xf32> to vector<4x376xf32>
    %81 = vector.broadcast %79 : vector<4x1xf32> to vector<4x376xf32>
    %82 = arith.mulf %81, %80 : vector<4x376xf32>
    %83 = arith.addf %78, %82 : vector<4x376xf32>
    %84 = vector.extract_strided_slice %57 {offsets = [0, 5], sizes = [4, 1], strides = [1, 1]} : vector<4x9xf32> to vector<4x1xf32>
    %85 = vector.extract_strided_slice %56 {offsets = [0, 78], sizes = [4, 376], strides = [1, 1]} : vector<4x526xf32> to vector<4x376xf32>
    %86 = vector.broadcast %84 : vector<4x1xf32> to vector<4x376xf32>
    %87 = arith.mulf %86, %85 : vector<4x376xf32>
    %88 = arith.addf %83, %87 : vector<4x376xf32>
    %89 = vector.extract_strided_slice %57 {offsets = [0, 6], sizes = [4, 1], strides = [1, 1]} : vector<4x9xf32> to vector<4x1xf32>
    %90 = vector.extract_strided_slice %56 {offsets = [0, 144], sizes = [4, 376], strides = [1, 1]} : vector<4x526xf32> to vector<4x376xf32>
    %91 = vector.broadcast %89 : vector<4x1xf32> to vector<4x376xf32>
    %92 = arith.mulf %91, %90 : vector<4x376xf32>
    %93 = arith.addf %88, %92 : vector<4x376xf32>
    %94 = vector.extract_strided_slice %57 {offsets = [0, 7], sizes = [4, 1], strides = [1, 1]} : vector<4x9xf32> to vector<4x1xf32>
    %95 = vector.extract_strided_slice %56 {offsets = [0, 147], sizes = [4, 376], strides = [1, 1]} : vector<4x526xf32> to vector<4x376xf32>
    %96 = vector.broadcast %94 : vector<4x1xf32> to vector<4x376xf32>
    %97 = arith.mulf %96, %95 : vector<4x376xf32>
    %98 = arith.addf %93, %97 : vector<4x376xf32>
    %99 = vector.extract_strided_slice %57 {offsets = [0, 8], sizes = [4, 1], strides = [1, 1]} : vector<4x9xf32> to vector<4x1xf32>
    %100 = vector.extract_strided_slice %56 {offsets = [0, 150], sizes = [4, 376], strides = [1, 1]} : vector<4x526xf32> to vector<4x376xf32>
    %101 = vector.broadcast %99 : vector<4x1xf32> to vector<4x376xf32>
    %102 = arith.mulf %101, %100 : vector<4x376xf32>
    %103 = arith.addf %98, %102 : vector<4x376xf32>
    %c0_14 = arith.constant 0 : index
    %c0_15 = arith.constant 0 : index
    %104 = vector.load %arg7[%c0_14, %c0_15] : memref<4x1xf32, #tpu.memory_space<vmem>>, vector<4x1xf32>
    %105 = vector.broadcast %104 : vector<4x1xf32> to vector<4x376xf32>
    %106 = arith.addf %103, %105 : vector<4x376xf32>
    %c0_16 = arith.constant 0 : index
    %c0_17 = arith.constant 0 : index
    %107 = vector.load %arg8[%c0_16, %c0_17] : memref<8x4xf32, #tpu.memory_space<vmem>>, vector<8x4xf32>
    %cst_18 = arith.constant dense<0.000000e+00> : vector<8x376xf32>
    %108 = tpu.matmul %107, %106, %cst_18 {dimension_numbers = #tpu.dot_dimension_numbers<[1], [0], [0], [1], [0, 0, 1, 1], [], []>} : vector<8x4xf32>, vector<4x376xf32>, vector<8x376xf32> -> vector<8x376xf32>
    %c0_19 = arith.constant 0 : index
    %c0_20 = arith.constant 0 : index
    %109 = vector.load %arg9[%c0_19, %c0_20] : memref<8x1xf32, #tpu.memory_space<vmem>>, vector<8x1xf32>
    %110 = vector.broadcast %109 : vector<8x1xf32> to vector<8x376xf32>
    %111 = arith.addf %108, %110 : vector<8x376xf32>
    %c0_21 = arith.constant 0 : index
    %c0_22 = arith.constant 0 : index
    %c0_23 = arith.constant 0 : index
    %112 = vector.load %arg10[%c0_21, %c0_22, %c0_23] : memref<1x8x384xf32, #tpu.memory_space<vmem>>, vector<1x8x376xf32>
    %113 = vector.shape_cast %112 : vector<1x8x376xf32> to vector<8x376xf32>
    %114 = vector.shape_cast %111 : vector<8x376xf32> to vector<1x8x376xf32>
    tpu.vector_store %arg10[%c0_21, %c0_22, %c0_23], %114 {strides = array<i32>} : memref<1x8x384xf32, #tpu.memory_space<vmem>>, vector<1x8x376xf32>,
    %cst_24 = arith.constant 0.000000e+00 : f32
    %115 = vector.broadcast %cst_24 : f32 to vector<8x8xf32>
    %c0_25 = arith.constant 0 : index
    %c0_26 = arith.constant 0 : index
    %c376 = arith.constant 376 : index
    %116 = vector.load %arg10[%c0_25, %c0_26, %c376] : memref<1x8x384xf32, #tpu.memory_space<vmem>>, vector<1x8x8xf32>
    %117 = vector.shape_cast %116 : vector<1x8x8xf32> to vector<8x8xf32>
    %118 = vector.shape_cast %115 : vector<8x8xf32> to vector<1x8x8xf32>
    tpu.vector_store %arg10[%c0_25, %c0_26, %c376], %118 {strides = array<i32>} : memref<1x8x384xf32, #tpu.memory_space<vmem>>, vector<1x8x8xf32>,
    return
  }
  func.func @transform_0(%arg0: i32) -> (i32, i32, i32) {
    %c0_i32 = arith.constant 0 : i32
    %c0_i32_0 = arith.constant 0 : i32
    %c0_i32_1 = arith.constant 0 : i32
    return %arg0, %c0_i32, %c0_i32_0 : i32, i32, i32
  }
  func.func @transform_1(%arg0: i32) -> (i32, i32) {
    %c0_i32 = arith.constant 0 : i32
    %c0_i32_0 = arith.constant 0 : i32
    %c0_i32_1 = arith.constant 0 : i32
    return %c0_i32, %c0_i32_0 : i32, i32
  }
  func.func @transform_2(%arg0: i32) -> (i32, i32) {
    %c0_i32 = arith.constant 0 : i32
    %c0_i32_0 = arith.constant 0 : i32
    %c0_i32_1 = arith.constant 0 : i32
    return %c0_i32, %c0_i32_0 : i32, i32
  }
  func.func @transform_3(%arg0: i32) -> (i32, i32) {
    %c0_i32 = arith.constant 0 : i32
    %c0_i32_0 = arith.constant 0 : i32
    %c0_i32_1 = arith.constant 0 : i32
    return %c0_i32, %c0_i32_0 : i32, i32
  }
  func.func @transform_4(%arg0: i32) -> (i32, i32) {
    %c0_i32 = arith.constant 0 : i32
    %c0_i32_0 = arith.constant 0 : i32
    %c0_i32_1 = arith.constant 0 : i32
    return %c0_i32, %c0_i32_0 : i32, i32
  }
  func.func @transform_5(%arg0: i32) -> (i32, i32) {
    %c0_i32 = arith.constant 0 : i32
    %c0_i32_0 = arith.constant 0 : i32
    %c0_i32_1 = arith.constant 0 : i32
    return %c0_i32, %c0_i32_0 : i32, i32
  }
  func.func @transform_6(%arg0: i32) -> (i32, i32) {
    %c0_i32 = arith.constant 0 : i32
    %c0_i32_0 = arith.constant 0 : i32
    %c0_i32_1 = arith.constant 0 : i32
    return %c0_i32, %c0_i32_0 : i32, i32
  }
  func.func @transform_7(%arg0: i32) -> (i32, i32) {
    %c0_i32 = arith.constant 0 : i32
    %c0_i32_0 = arith.constant 0 : i32
    %c0_i32_1 = arith.constant 0 : i32
    return %c0_i32, %c0_i32_0 : i32, i32
  }
  func.func @transform_8(%arg0: i32) -> (i32, i32) {
    %c0_i32 = arith.constant 0 : i32
    %c0_i32_0 = arith.constant 0 : i32
    %c0_i32_1 = arith.constant 0 : i32
    return %c0_i32, %c0_i32_0 : i32, i32
  }
  func.func @transform_9(%arg0: i32) -> (i32, i32, i32) {
    %c0_i32 = arith.constant 0 : i32
    %c0_i32_0 = arith.constant 0 : i32
    %c0_i32_1 = arith.constant 0 : i32
    return %arg0, %c0_i32, %c0_i32_0 : i32, i32, i32
  }
}

</mosaic_0001>

<bundles_post_ra>
// kernel: dlkcb_forward.1
= control target key start
LH: loop header
LB: loop body
LE: loop exit
PB: predicated region body
PF: predicated region fallthrough
CT: control target
= control target key end

     0   :  { %s1565_s30 = smov 0   ;;  %s1986_s0 = inlined_call_operand.vmem [shape: f32[2,4,576], index: 0, kind: input, shape index: {}]   ;;  %s1987_s1 = inlined_call_operand.vmem [shape: f32[4,4], index: 1, kind: input, shape index: {}]   ;;  %s1988_s2 = inlined_call_operand.vmem [shape: f32[4,1], index: 2, kind: input, shape index: {}]   ;;  %s1989_s3 = inlined_call_operand.vmem [shape: f32[4,9], index: 3, kind: input, shape index: {}]   ;;  %s1990_s4 = inlined_call_operand.vmem [shape: f32[4,1], index: 4, kind: input, shape index: {}]   ;;  %s1991_s5 = inlined_call_operand.vmem [shape: f32[4,9], index: 5, kind: input, shape index: {}]   ;;  %s1992_s6 = inlined_call_operand.vmem [shape: f32[4,1], index: 6, kind: input, shape index: {}]   ;;  %s1993_s7 = inlined_call_operand.vmem [shape: f32[8,4], index: 7, kind: input, shape index: {}]   ;;  %s1994_s8 = inlined_call_operand.vmem [shape: f32[8,1], index: 8, kind: input, shape index: {}]   ;;  %s1995_s9 = inlined_call_operand.vmem [shape: f32[2,8,384], index: 9, kind: output, shape index: {}]  }
   0x1 LB: > { %s1386_s10 = sadd.s32 4294967295, %s1486_s30   ;;  %p1390_p0 = scmp.ge.s32.totalorder %s1486_s30, 1  ;;  %s1486_s30 = sphi %s1565_s30, %s19_s30  }
   0x2   : > { %p287_p1 = scmp.lt.s32.totalorder %s1486_s30, 3 }
   0x4   : > { %p288_p2 = pnand %p1390_p0, %p287_p1 }
   0x5   : > { %p323_p3 = scmp.lt.s32.totalorder (!%p288_p2), %s1386_s10, 1  ;;  %s1499_s25 = smov (!%p288_p2), 103  }
   0x6   : > { %291 = sbr.rel (%p288_p2) target bundleno = 785 (0x311), region = 56  ;;  %s1500_s26 = smov (!%p288_p2), 127  }
   0x7   : > { %s1501_s27 = smov (!%p288_p2), 80   ;;  %s1502_s28 = smov (!%p288_p2), 126  }
   0x8   : > { %s1503_s29 = smov (!%p288_p2), 79   ;;  %s1504_s11 = smov (!%p288_p2), 104  }
   0x9   : > { %s1505_s12 = smov (!%p288_p2), 78   ;;  %s1508_s17 = smov (!%p288_p2), 122  }
   0xa   : > { %s1509_s18 = smov (!%p288_p2), 56   ;;  %s1510_s19 = smov (!%p288_p2), 53  }
   0xb   : > { %v1488_v0 = vmov 0.0   ;;  %v575_v1 = vld [vmem:[%s1989_s3] sm:$0xf]  ;;  %s1997_s10 = smov (!%p323_p3, %s1386_s10), 1  ;;  %v1489_v2 = vmov 2   ;;  %v1490_v3 = vmov 1  }
   0xc   : > { %427 = vmatprep.mubr.f32.mxu0 %v1488_v0  ;;  %498 = vmatprep.mubr.f32.mxu1 %v1488_v0  ;;  %s1422_s13 = smul.u32 20, %s1997_s10  ;;  %vm352_vm0 = vcmask 1043456   ;;  %v1491_v6 = vmov 3   ;;  %v1492_v7 = vmov 8   ;;  %v336_v10 = vld [vmem:[%s1987_s1] sm:$0xf] }
   0xd   : > { %1460 = vset.pattern.permute.xlu1 %v1489_v2  ;;  %1459 = vset.pattern.permute.xlu0 %v1490_v3  ;;  %vm348_vm1 = vcmask 31744   ;;  %vm1493_vm2 = vmmov 0   ;;  %v337_v12 = vld [vmem:[%s1988_s2] sm:$0xf]  ;;  %v1494_v13 = vmov 4   ;;  %v1495_v14 = vmov 0  }
   0xe   : > { %631 = vperm.xlu1 %1460, %v575_v1   ;;  %592 = vperm.xlu0 %1459, %v575_v1   ;;  %s327_s16 = scalar_lea.vmem %s1986_s0, %s1422_s13  ;;  %v903_v15 = vld [vmem:[%s1990_s4] sm:$0xf]  ;;  %v1496_v16 = vmov 6   ;;  %v1497_v18 = vmov 7   ;;  %v1498_v19 = vmov 5   ;;  %s1506_s13 = smov 102  }
   0xf   : > { %v333_v4 = vld [vmem:[%s327_s16] sm:$0xff]  ;;  %v334_v5 = vld [vmem:[%s327_s16 + $0x8] sm:$0xff]  ;;  %v335_v11 = vld [vmem:[%s327_s16 + $0x10] sm:$0xf]  ;;  %vm615_vm3 = vcmask 1039360   ;;  %vm654_vm4 = vcmask 1031168  }
  0x10   : > { %v346_v8 = vcombine.high %v333_v4, %v333_v4  ;;  %v347_v9 = vcombine.high %v334_v5, %v334_v5  ;;  %v1611_v17 = vld [vmem:[%s1991_s5] sm:$0xf]  ;;  %vm693_vm5 = vcmask 850944   ;;  %vm732_vm6 = vcmask 842752   ;;  %s1507_s16 = smov 125   ;;  %s1511_s20 = smov 50  }
  0x11   : > { %vm771_vm7 = vcmask 834560   ;;  %vm810_vm8 = vcmask 654336   ;;  %vm849_vm9 = vcmask 646144   ;;  %vm888_vm10 = vcmask 637952   ;;  %s1512_s21 = smov 109   ;;  %s1513_s22 = smov 112  }
  0x12   : > { %1461 = vset.pattern.permute.xlu1 %v1491_v6  ;;  %1465 = vset.pattern.permute.xlu0 %v1492_v7  ;;  %s1514_s23 = smov 106   ;;  %vm942_vm11 = vcmask 1022976   ;;  %vm967_vm12 = vcmask 998400   ;;  %vm996_vm13 = vcmask 457728   ;;  %vm1026_vm14 = vcmask 433152  }
  0x13   : > { %670 = vperm.xlu1 %1461, %v575_v1   ;;  %865 = vperm.xlu0 %1465, %v575_v1   ;;  %vm1056_vm15 = vcmask 408576  }
  0x14   : > { %1393 = vmatprep.subr.msk.mxu0 %vm352_vm0, %v346_v8  ;;  %1396 = vmatprep.subr.msk.mxu1 %vm352_vm0, %v347_v9 }
  0x15   : > { %1394 = vmatpush1.msk.msra.mxu0 %vm352_vm0, %v333_v4  ;;  %1397 = vmatpush1.msk.msra.mxu1 %vm352_vm0, %v334_v5 }
  0x16   : > { %1395 = vmatmul.mubr.msk.f32.vlgmr.msra.gmra.mxu0 %vm348_vm1, %v336_v10  ;;  %1398 = vmatmul.mubr.msk.f32.vlgmr.msra.gmra.mxu1 %vm348_vm1, %v336_v10 }
  0x17   : > { %1412 = vmatprep.subr.mxu0 %v1488_v0  ;;  %1414 = vmatprep.mubr.msk.f32.mxu0 %vm1493_vm2, %v1488_v0 }
  0x18   : > { %1413 = vmatpush3.msk.msra.mxu0 %vm352_vm0, %v335_v11  ;;  %1462 = vset.pattern.permute.xlu1 %v1494_v13 }
  0x19   : > { %709 = vperm.xlu1 %1462, %v575_v1   ;;  %1466 = vset.pattern.permute.xlu0 %v1495_v14 }
  0x1a   : > { %1415 = vmatmul.mubr.msk.f32.vlgmr.msra.gmra.mxu0 %vm348_vm1, %v336_v10  ;;  %340 = vperm.xlu0 %1466, %v337_v12  }
  0x1b   : > { %1417 = vmatprep.subr.mxu0 %v1488_v0  ;;  %1248 = vmatprep.mubr.f32.mxu1 %v1488_v0 }
  0x1c   : > { %1419 = vmatprep.mubr.msk.f32.mxu0 %vm1493_vm2, %v1488_v0  ;;  %vm1086_vm2 = vcmask 916480  }
  0x1d   : > { %1463 = vset.pattern.permute.xlu1 %v1496_v16 }
  0x1e   : > { %787 = vperm.xlu1 %1463, %v575_v1   ;;  %906 = vperm.xlu0 %1466, %v903_v15  }
  0x22   : > { %1464 = vset.pattern.permute.xlu1 %v1497_v18  ;;  %1469 = vset.pattern.permute.xlu0 %v1489_v2 }
  0x23   : > { %826 = vperm.xlu1 %1464, %v575_v1   ;;  %952 = vperm.xlu0 %1469, %v1611_v17  }
  0x27   : > { %1467 = vset.pattern.permute.xlu1 %v1495_v14  ;;  %1470 = vset.pattern.permute.xlu0 %v1498_v19 }
  0x28   : > { %578 = vperm.xlu1 %1467, %v575_v1   ;;  %748 = vperm.xlu0 %1470, %v575_v1  }
  0x2c   : > { %1468 = vset.pattern.permute.xlu1 %v1490_v3 }
  0x2d   : > { %927 = vperm.xlu1 %1468, %v1611_v17  }
  0x31   : > { %1471 = vset.pattern.permute.xlu1 %v1491_v6 }
  0x32   : > { %977 = vperm.xlu1 %1471, %v1611_v17  }
  0x36   : > { %1472 = vset.pattern.permute.xlu1 %v1494_v13 }
  0x37   : > { %1007 = vperm.xlu1 %1472, %v1611_v17  }
  0x3b   : > { %1473 = vset.pattern.permute.xlu1 %v1496_v16 }
  0x89   : > { %v1619_v20 = vpop.permute.xlu1 %631  ;;  %v1621_v21 = vpop.permute.xlu0 %592 }
  0x8e   : > { %v1623_v22 = vpop.permute.xlu1 %670  ;;  %v1625_v23 = vpop.permute.xlu0 %865 }
  0x94   : > { %v1627_v24 = vpop.permute.xlu1 %709 }
  0x95   : > { %v341_v25 = vpop.permute.xlu0 %340 }
  0x99   : > { %v1631_v29 = vpop.permute.xlu1 %787  ;;  %v1657_v44 = vpop.permute.xlu0 %906 }
  0x9e   : > { %v1645_v38 = vpop.permute.xlu1 %826  ;;  %v1677_v50 = vpop.permute.xlu0 %952 }
  0xa3   : > { %v1661_v45 = vpop.permute.xlu1 %578  ;;  %v749_v56 = vpop.permute.xlu0 %748 }
  0xd6   : > { %v429_v26 = vpop.f32.mrf.mxu0  ;;  %v500_v27 = vpop.f32.mrf.mxu1 }
  0xd7   : > { %v1629_v28 = vadd.f32 %v500_v27, %v341_v25  ;;  %v1633_v31 = vadd.f32 %v429_v26, %v341_v25 }
  0xd8   : > { %v431_v30 = vpop.f32.mrf.mxu0  ;;  %v502_v39 = vpop.f32.mrf.mxu1 }
  0xd9   : > { %v714_v32 = vmul.f32 %v1627_v24, %v1629_v28  ;;  %v597_v33 = vmul.f32 %v1621_v21, %v1629_v28  ;;  %v712_v36 = vmul.f32 %v1627_v24, %v1633_v31  ;;  %v595_v37 = vmul.f32 %v1621_v21, %v1633_v31 }
  0xda   : > { %v571_v34 = vpop.f32.mrf.mxu0  ;;  %v1649_v40 = vadd.f32 %v502_v39, %v341_v25  ;;  %v792_v42 = vmul.f32 %v1631_v29, %v1629_v28  ;;  %v636_v43 = vmul.f32 %v1619_v20, %v1629_v28  ;;  %v790_v46 = vmul.f32 %v1631_v29, %v1633_v31 }
  0xdb   : > { %726 = vrot.lane.b32.xlu1 %v714_v32, %s1499_s25  ;;  %609 = vrot.lane.b32.xlu0 %v597_v33, %s1500_s26  ;;  %v1651_v41 = vadd.f32 %v571_v34, %v341_v25  ;;  %v634_v47 = vmul.f32 %v1619_v20, %v1633_v31  ;;  %v829_v51 = vmul.f32 %v1645_v38, %v1633_v31 }
  0xdc   : > { %v1416_v35 = vpop.f32.mrf.mxu0  ;;  %v1669_v48 = vmul.f32 %v1661_v45, %v1649_v40  ;;  %v675_v52 = vmul.f32 %v1623_v22, %v1629_v28  ;;  %v1685_v53 = vadd.f32 %v431_v30, %v341_v25  ;;  %v870_v54 = vmul.f32 %v1625_v23, %v1629_v28 }
  0xdd   : > { %v1673_v49 = vmul.f32 %v1661_v45, %v1651_v41  ;;  %v673_v55 = vmul.f32 %v1623_v22, %v1633_v31  ;;  %v753_v58 = vmul.f32 %v749_v56, %v1629_v28  ;;  %v598_v59 = vmul.f32 %v1621_v21, %v1649_v40 }
  0xde   : > { %v596_v57 = vmul.f32 %v1621_v21, %v1685_v53  ;;  %v751_v60 = vmul.f32 %v749_v56, %v1633_v31  ;;  %v635_v61 = vmul.f32 %v1619_v20, %v1685_v53  ;;  %v831_v62 = vmul.f32 %v1645_v38, %v1629_v28 }
  0xdf   : > { %722 = vrot.lane.b32.xlu1 %v712_v36, %s1499_s25  ;;  %605 = vrot.lane.b32.xlu0 %v595_v37, %s1500_s26  ;;  %v637_v63 = vmul.f32 %v1619_v20, %v1649_v40  ;;  %v868_v1 = vmul.f32 %v1625_v23, %v1633_v31  ;;  %v674_v2 = vmul.f32 %v1623_v22, %v1685_v53 }
  0xe0   : > { %v713_v3 = vmul.f32 %v1627_v24, %v1685_v53  ;;  %v676_v4 = vmul.f32 %v1623_v22, %v1649_v40  ;;  %v715_v5 = vmul.f32 %v1627_v24, %v1649_v40  ;;  %v752_v6 = vmul.f32 %v749_v56, %v1685_v53 }
  0xe1   : > { %v791_v8 = vmul.f32 %v1631_v29, %v1685_v53  ;;  %v754_v9 = vmul.f32 %v749_v56, %v1649_v40  ;;  %v793_v10 = vmul.f32 %v1631_v29, %v1649_v40  ;;  %v830_v11 = vmul.f32 %v1645_v38, %v1685_v53 }
  0xe2   : > { %v869_v12 = vmul.f32 %v1625_v23, %v1685_v53  ;;  %v832_v13 = vmul.f32 %v1645_v38, %v1649_v40  ;;  %v871_v15 = vmul.f32 %v1625_v23, %v1649_v40  ;;  %v599_v16 = vmul.f32 %v1621_v21, %v1651_v41 }
  0xe3   : > { %804 = vrot.lane.b32.xlu1 %v792_v42, %s1501_s27  ;;  %648 = vrot.lane.b32.xlu0 %v636_v43, %s1502_s28  ;;  %v638_v19 = vmul.f32 %v1619_v20, %v1651_v41  ;;  %v677_v25 = vmul.f32 %v1623_v22, %v1651_v41  ;;  %v716_v26 = vmul.f32 %v1627_v24, %v1651_v41  ;;  %v1784_v24 = vpop.permute.xlu1 %927 }
  0xe4   : > { %v755_v27 = vmul.f32 %v749_v56, %v1651_v41  ;;  %v872_v21 = vmul.f32 %v1625_v23, %v1651_v41  ;;  %v794_v20 = vmul.f32 %v1631_v29, %v1651_v41  ;;  %v833_v22 = vmul.f32 %v1645_v38, %v1651_v41  ;;  %v1156_v23 = vld [vmem:[%s1992_s6] sm:$0xf] }
  0xe5   : > { %v582_v56 = vmul.f32 %v1661_v45, %v1685_v53  ;;  %v583_v53 = vmul.f32 %v1661_v45, %v1629_v28 }
  0xe7   : > { %800 = vrot.lane.b32.xlu1 %v790_v46, %s1501_s27  ;;  %644 = vrot.lane.b32.xlu0 %v634_v47, %s1502_s28 }
  0xeb   : > { %839 = vrot.lane.b32.xlu1 %v829_v51, %s1503_s29  ;;  %687 = vrot.lane.b32.xlu0 %v675_v52, %s1504_s11 }
  0xef   : > { %882 = vrot.lane.b32.xlu1 %v870_v54, %s1505_s12  ;;  %683 = vrot.lane.b32.xlu0 %v673_v55, %s1504_s11 }
  0xf3   : > { %607 = vrot.lane.b32.xlu1 %v596_v57, %s1500_s26  ;;  %765 = vrot.lane.b32.xlu0 %v753_v58, %s1506_s13  ;;  %v581_v57 = vmul.f32 %v1661_v45, %v1633_v31 }
  0xf7   : > { %611 = vrot.lane.b32.xlu1 %v598_v59, %s1500_s26  ;;  %761 = vrot.lane.b32.xlu0 %v751_v60, %s1506_s13 }
  0xfb   : > { %646 = vrot.lane.b32.xlu1 %v635_v61, %s1502_s28  ;;  %843 = vrot.lane.b32.xlu0 %v831_v62, %s1503_s29 }
  0xff   : > { %650 = vrot.lane.b32.xlu1 %v637_v63, %s1502_s28  ;;  %878 = vrot.lane.b32.xlu0 %v868_v1, %s1505_s12 }
 0x103   : > { %685 = vrot.lane.b32.xlu1 %v674_v2, %s1504_s11  ;;  %724 = vrot.lane.b32.xlu0 %v713_v3, %s1499_s25 }
 0x107   : > { %689 = vrot.lane.b32.xlu1 %v676_v4, %s1504_s11  ;;  %728 = vrot.lane.b32.xlu0 %v715_v5, %s1499_s25 }
 0x10b   : > { %763 = vrot.lane.b32.xlu1 %v752_v6, %s1506_s13  ;;  %802 = vrot.lane.b32.xlu0 %v791_v8, %s1501_s27 }
 0x10f   : > { %767 = vrot.lane.b32.xlu1 %v754_v9, %s1506_s13  ;;  %806 = vrot.lane.b32.xlu0 %v793_v10, %s1501_s27 }
 0x113   : > { %841 = vrot.lane.b32.xlu1 %v830_v11, %s1503_s29  ;;  %880 = vrot.lane.b32.xlu0 %v869_v12, %s1505_s12 }
 0x117   : > { %845 = vrot.lane.b32.xlu1 %v832_v13, %s1503_s29  ;;  %884 = vrot.lane.b32.xlu0 %v871_v15, %s1505_s12 }
 0x11b   : > { %613 = vrot.lane.b32.xlu1 %v599_v16, %s1500_s26  ;;  %652 = vrot.lane.b32.xlu0 %v638_v19, %s1502_s28  ;;  %s1423_s28 = smul.u32 24, %s1997_s10 }
 0x11f   : > { %691 = vrot.lane.b32.xlu1 %v677_v25, %s1504_s11  ;;  %730 = vrot.lane.b32.xlu0 %v716_v26, %s1499_s25 }
 0x123   : > { %769 = vrot.lane.b32.xlu1 %v755_v27, %s1506_s13  ;;  %886 = vrot.lane.b32.xlu0 %v872_v21, %s1505_s12  ;;  %s332_s12 = scalar_lea.vmem %s1995_s9, %s1423_s28 }
 0x127   : > { %808 = vrot.lane.b32.xlu1 %v794_v20, %s1501_s27  ;;  %1037 = vperm.xlu0 %1470, %v1611_v17  }
 0x12b   : > { %847 = vrot.lane.b32.xlu1 %v833_v22, %s1503_s29  ;;  %1475 = vset.pattern.permute.xlu0 %v1492_v7  ;;  %v1786_v7 = vpop.permute.xlu1 %977 }
 0x12c   : > { %1127 = vperm.xlu0 %1475, %v1611_v17  }
 0x12f   : > { %1067 = vperm.xlu1 %1473, %v1611_v17   ;;  %v1788_v29 = vpop.permute.xlu1 %1007 }
 0x130   : > { %1477 = vset.pattern.permute.xlu0 %v1495_v14 }
 0x133   : > { %1474 = vset.pattern.permute.xlu1 %v1497_v18 }
 0x134   : > { %1097 = vperm.xlu1 %1474, %v1611_v17  }
 0x138   : > { %1476 = vset.pattern.permute.xlu1 %v1495_v14 }
 0x139   : > { %917 = vperm.xlu1 %1476, %v1611_v17  }
 0x13d   : > { %1159 = vperm.xlu1 %1476, %v1156_v23  }
 0x14d   : > { %v1790_v30 = vpop.permute.xlu1 %726  ;;  %v610_v18 = vpop.permute.xlu0 %609 }
 0x151   : > { %v723_v32 = vpop.permute.xlu1 %722  ;;  %v606_v33 = vpop.permute.xlu0 %605 }
 0x155   : > { %v1792_v34 = vpop.permute.xlu1 %804  ;;  %v649_v14 = vpop.permute.xlu0 %648 }
 0x159   : > { %v801_v17 = vpop.permute.xlu1 %800  ;;  %v645_v35 = vpop.permute.xlu0 %644 }
 0x15d   : > { %v1794_v36 = vpop.permute.xlu1 %839  ;;  %v688_v37 = vpop.permute.xlu0 %687 }
 0x161   : > { %v1796_v38 = vpop.permute.xlu1 %882  ;;  %v684_v39 = vpop.permute.xlu0 %683 }
 0x165   : > { %v608_v40 = vpop.permute.xlu1 %607  ;;  %v766_v41 = vpop.permute.xlu0 %765 }
 0x166   : > { %v616_v54 = vsel %vm615_vm3, %v606_v33, %v608_v40  ;;  %v617_v55 = vsel %vm615_vm3, %v608_v40, %v610_v18 }
 0x167   : > { %v625_v62 = vadd.f32 %v616_v54, %v581_v57  ;;  %v626_v63 = vadd.f32 %v617_v55, %v582_v56 }
 0x169   : > { %v1798_v42 = vpop.permute.xlu1 %611  ;;  %v762_v43 = vpop.permute.xlu0 %761 }
 0x16a   : > { %v618_v1 = vsel %vm615_vm3, %v610_v18, %v1798_v42 }
 0x16b   : > { %v627_v9 = vadd.f32 %v618_v1, %v583_v53 }
 0x16d   : > { %v647_v46 = vpop.permute.xlu1 %646  ;;  %v1800_v47 = vpop.permute.xlu0 %843 }
 0x16e   : > { %v655_v60 = vsel %vm654_vm4, %v645_v35, %v647_v46  ;;  %v656_v61 = vsel %vm654_vm4, %v647_v46, %v649_v14 }
 0x16f   : > { %v664_v31 = vadd.f32 %v655_v60, %v625_v62  ;;  %v665_v4 = vadd.f32 %v656_v61, %v626_v63 }
 0x171   : > { %v1802_v51 = vpop.permute.xlu1 %650  ;;  %v879_v52 = vpop.permute.xlu0 %878 }
 0x172   : > { %v657_v8 = vsel %vm654_vm4, %v649_v14, %v1802_v51 }
 0x173   : > { %v666_v13 = vadd.f32 %v657_v8, %v627_v9 }
 0x175   : > { %v686_v58 = vpop.permute.xlu1 %685  ;;  %v725_v59 = vpop.permute.xlu0 %724 }
 0x176   : > { %v694_v2 = vsel %vm693_vm5, %v684_v39, %v686_v58  ;;  %v695_v3 = vsel %vm693_vm5, %v686_v58, %v688_v37  ;;  %v733_v45 = vsel %vm732_vm6, %v723_v32, %v725_v59  ;;  %v734_v16 = vsel %vm732_vm6, %v725_v59, %v1790_v30 }
 0x177   : > { %v703_v10 = vadd.f32 %v694_v2, %v664_v31  ;;  %v704_v11 = vadd.f32 %v695_v3, %v665_v4 }
 0x179   : > { %v1818_v5 = vpop.permute.xlu1 %689  ;;  %v1820_v6 = vpop.permute.xlu0 %728  ;;  %v742_v26 = vadd.f32 %v733_v45, %v703_v10  ;;  %v743_v27 = vadd.f32 %v734_v16, %v704_v11 }
 0x17a   : > { %v696_v12 = vsel %vm693_vm5, %v688_v37, %v1818_v5  ;;  %v735_v32 = vsel %vm732_vm6, %v1790_v30, %v1820_v6 }
 0x17b   : > { %v705_v21 = vadd.f32 %v696_v12, %v666_v13 }
 0x17d   : > { %v764_v15 = vpop.permute.xlu1 %763  ;;  %v803_v28 = vpop.permute.xlu0 %802  ;;  %v744_v14 = vadd.f32 %v735_v32, %v705_v21 }
 0x17e   : > { %v772_v19 = vsel %vm771_vm7, %v762_v43, %v764_v15  ;;  %v773_v25 = vsel %vm771_vm7, %v764_v15, %v766_v41  ;;  %v811_v35 = vsel %vm810_vm8, %v801_v17, %v803_v28  ;;  %v812_v37 = vsel %vm810_vm8, %v803_v28, %v1792_v34 }
 0x17f   : > { %v781_v20 = vadd.f32 %v772_v19, %v742_v26  ;;  %v782_v22 = vadd.f32 %v773_v25, %v743_v27 }
 0x181   : > { %v1831_v23 = vpop.permute.xlu1 %767  ;;  %v1833_v18 = vpop.permute.xlu0 %806  ;;  %v820_v39 = vadd.f32 %v811_v35, %v781_v20  ;;  %v821_v40 = vadd.f32 %v812_v37, %v782_v22 }
 0x182   : > { %v774_v33 = vsel %vm771_vm7, %v766_v41, %v1831_v23  ;;  %v813_v17 = vsel %vm810_vm8, %v1792_v34, %v1833_v18 }
 0x183   : > { %v783_v43 = vadd.f32 %v774_v33, %v744_v14 }
 0x185   : > { %v842_v46 = vpop.permute.xlu1 %841  ;;  %v881_v54 = vpop.permute.xlu0 %880  ;;  %v822_v59 = vadd.f32 %v813_v17, %v783_v43 }
 0x186   : > { %v850_v55 = vsel %vm849_vm9, %v1794_v36, %v842_v46  ;;  %v851_v30 = vsel %vm849_vm9, %v842_v46, %v1800_v47  ;;  %v889_v57 = vsel %vm888_vm10, %v879_v52, %v881_v54  ;;  %v890_v58 = vsel %vm888_vm10, %v881_v54, %v1796_v38 }
 0x187   : > { %v859_v41 = vadd.f32 %v850_v55, %v820_v39  ;;  %v860_v56 = vadd.f32 %v851_v30, %v821_v40 }
 0x189   : > { %v898_v60 = vadd.f32 %v889_v57, %v859_v41  ;;  %v899_v61 = vadd.f32 %v890_v58, %v860_v56  ;;  %v1853_v62 = vpop.permute.xlu1 %845  ;;  %v1855_v36 = vpop.permute.xlu0 %884 }
 0x18a   : > { %v852_v63 = vsel %vm849_vm9, %v1800_v47, %v1853_v62  ;;  %v891_v52 = vsel %vm888_vm10, %v1796_v38, %v1855_v36 }
 0x18b   : > { %v1861_v1 = vadd.f32 %v1657_v44, %v899_v61  ;;  %v861_v34 = vadd.f32 %v852_v63, %v822_v59  ;;  %v1867_v2 = vadd.f32 %v1657_v44, %v898_v60 }
 0x18d   : > { %v900_v3 = vadd.f32 %v891_v52, %v861_v34  ;;  %v931_v53 = vmul.f32 %v1784_v24, %v1861_v1  ;;  %v614_v31 = vpop.permute.xlu1 %613  ;;  %v930_v8 = vmul.f32 %v1784_v24, %v1867_v2  ;;  %v653_v38 = vpop.permute.xlu0 %652  ;;  %v956_v10 = vmul.f32 %v1677_v50, %v1861_v1 }
 0x18e   : > { %v619_v13 = vsel %vm615_vm3, %v1798_v42, %v614_v31  ;;  %v981_v15 = vmul.f32 %v1786_v7, %v1861_v1  ;;  %v629_v28 = vadd.f32 %v614_v31, %v1673_v49  ;;  %v980_v42 = vmul.f32 %v1786_v7, %v1867_v2 }
 0x18f   : > { %v1872_v4 = vadd.f32 %v1657_v44, %v900_v3  ;;  %938 = vrot.lane.b32.xlu1 %v931_v53, %s1507_s16  ;;  %v628_v16 = vadd.f32 %v619_v13, %v1669_v48  ;;  %v658_v26 = vsel %vm654_vm4, %v1802_v51, %v653_v38  ;;  %v1011_v20 = vmul.f32 %v1788_v29, %v1861_v1 }
 0x190   : > { %v668_v25 = vadd.f32 %v653_v38, %v629_v28  ;;  %v1010_v14 = vmul.f32 %v1788_v29, %v1867_v2  ;;  %vm1116_vm3 = vcmask 891904   ;;  %vm1146_vm4 = vcmask 867328  }
 0x191   : > { %v932_v47 = vmul.f32 %v1784_v24, %v1872_v4  ;;  %v692_v9 = vpop.permute.xlu1 %691  ;;  %v957_v11 = vmul.f32 %v1677_v50, %v1872_v4  ;;  %v731_v12 = vpop.permute.xlu0 %730  ;;  %v955_v24 = vmul.f32 %v1677_v50, %v1867_v2  ;;  %v982_v19 = vmul.f32 %v1786_v7, %v1872_v4 }
 0x192   : > { %v667_v49 = vadd.f32 %v658_v26, %v628_v16  ;;  %v697_v48 = vsel %vm693_vm5, %v1818_v5, %v692_v9  ;;  %v1012_v21 = vmul.f32 %v1788_v29, %v1872_v4  ;;  %v707_v22 = vadd.f32 %v692_v9, %v668_v25 }
 0x193   : > { %940 = vrot.lane.b32.xlu0 %v932_v47, %s1507_s16  ;;  %936 = vrot.lane.b32.xlu1 %v930_v8, %s1507_s16  ;;  %v736_v37 = vsel %vm732_vm6, %v1820_v6, %v731_v12  ;;  %vm1327_vm5 = vcmask 982016   ;;  %vm1329_vm6 = vcmask 1048512  }
 0x194   : > { %v706_v51 = vadd.f32 %v697_v48, %v667_v49  ;;  %v746_v5 = vadd.f32 %v731_v12, %v707_v22 }
 0x195   : > { %v770_v45 = vpop.permute.xlu1 %769  ;;  %v887_v50 = vpop.permute.xlu0 %886 }
 0x196   : > { %v745_v39 = vadd.f32 %v736_v37, %v706_v51  ;;  %v775_v40 = vsel %vm771_vm7, %v1831_v23, %v770_v45  ;;  %v785_v46 = vadd.f32 %v770_v45, %v746_v5 }
 0x197   : > { %963 = vrot.lane.b32.xlu0 %v956_v10, %s1508_s17  ;;  %965 = vrot.lane.b32.xlu1 %v957_v11, %s1508_s17 }
 0x198   : > { %v784_v30 = vadd.f32 %v775_v40, %v745_v39 }
 0x199   : > { %v809_v27 = vpop.permute.xlu1 %808 }
 0x19a   : > { %v814_v55 = vsel %vm810_vm8, %v1833_v18, %v809_v27  ;;  %v824_v6 = vadd.f32 %v809_v27, %v785_v46 }
 0x19b   : > { %961 = vrot.lane.b32.xlu0 %v955_v24, %s1508_s17  ;;  %990 = vrot.lane.b32.xlu1 %v981_v15, %s1509_s18  ;;  %v823_v17 = vadd.f32 %v814_v55, %v784_v30 }
 0x19d   : > { %v848_v35 = vpop.permute.xlu1 %847 }
 0x19e   : > { %v853_v41 = vsel %vm849_vm9, %v1853_v62, %v848_v35  ;;  %v863_v57 = vadd.f32 %v848_v35, %v824_v6  ;;  %v892_v62 = vsel %vm888_vm10, %v1855_v36, %v887_v50 }
 0x19f   : > { %992 = vrot.lane.b32.xlu0 %v982_v19, %s1509_s18  ;;  %988 = vrot.lane.b32.xlu1 %v980_v42, %s1509_s18  ;;  %v862_v23 = vadd.f32 %v853_v41, %v823_v17 }
 0x1a0   : > { %v902_v61 = vadd.f32 %v887_v50, %v863_v57 }
 0x1a1   : > { %v901_v63 = vadd.f32 %v892_v62, %v862_v23 }
 0x1a2   : > { %v1038_v32 = vpop.permute.xlu0 %1037  ;;  %v913_v3 = vadd.f32 %v1657_v44, %v902_v61 }
 0x1a3   : > { %1022 = vrot.lane.b32.xlu0 %v1012_v21, %s1510_s19  ;;  %1020 = vrot.lane.b32.xlu1 %v1011_v20, %s1510_s19  ;;  %v1042_v33 = vmul.f32 %v1038_v32, %v1872_v4  ;;  %v1041_v43 = vmul.f32 %v1038_v32, %v1861_v1  ;;  %v1040_v56 = vmul.f32 %v1038_v32, %v1867_v2 }
 0x1a4   : > { %v912_v53 = vadd.f32 %v1657_v44, %v901_v63 }
 0x1a6   : > { %v983_v36 = vmul.f32 %v1786_v7, %v912_v53  ;;  %v1013_v38 = vmul.f32 %v1788_v29, %v912_v53  ;;  %v1043_v44 = vmul.f32 %v1038_v32, %v912_v53  ;;  %v1166_v29 = vld [vmem:[%s1994_s8] sm:$0xff] }
 0x1a7   : > { %1052 = vrot.lane.b32.xlu0 %v1042_v33, %s1511_s20  ;;  %1018 = vrot.lane.b32.xlu1 %v1010_v14, %s1510_s19  ;;  %v1128_v60 = vpop.permute.xlu0 %1127 }
 0x1a8   : > { %v1131_v34 = vmul.f32 %v1128_v60, %v1872_v4  ;;  %v1132_v9 = vmul.f32 %v1128_v60, %v912_v53  ;;  %v1133_v10 = vmul.f32 %v1128_v60, %v913_v3  ;;  %v1130_v7 = vmul.f32 %v1128_v60, %v1861_v1 }
 0x1aa   : > { %v1068_v54 = vpop.permute.xlu1 %1067 }
 0x1ab   : > { %1050 = vrot.lane.b32.xlu1 %v1041_v43, %s1511_s20  ;;  %v1071_v18 = vmul.f32 %v1068_v54, %v1872_v4  ;;  %v1070_v52 = vmul.f32 %v1068_v54, %v1861_v1  ;;  %v1073_v31 = vmul.f32 %v1068_v54, %v913_v3  ;;  %v1072_v11 = vmul.f32 %v1068_v54, %v912_v53 }
 0x1af   : > { %v1098_v58 = vpop.permute.xlu1 %1097  ;;  %1048 = vrot.lane.b32.xlu1 %v1040_v56, %s1511_s20 }
 0x1b0   : > { %v1100_v59 = vmul.f32 %v1098_v58, %v1861_v1  ;;  %v1101_v47 = vmul.f32 %v1098_v58, %v1872_v4  ;;  %v1103_v8 = vmul.f32 %v1098_v58, %v913_v3  ;;  %v1102_v12 = vmul.f32 %v1098_v58, %v912_v53 }
 0x1b2   : > { %1108 = vrot.lane.b32.xlu0 %v1100_v59, %s1512_s21 }
 0x1b3   : > { %1080 = vrot.lane.b32.xlu1 %v1071_v18, %s1513_s22 }
 0x1b4   : > { %v918_v13 = vpop.permute.xlu1 %917 }
 0x1b5   : > { %v921_v40 = vmul.f32 %v918_v13, %v1861_v1  ;;  %v922_v43 = vmul.f32 %v918_v13, %v1872_v4  ;;  %v920_v6 = vmul.f32 %v918_v13, %v1867_v2 }
 0x1b6   : > { %1140 = vrot.lane.b32.xlu0 %v1131_v34, %s1514_s23 }
 0x1b7   : > { %1078 = vrot.lane.b32.xlu1 %v1070_v52, %s1513_s22 }
 0x1b8   : > { %v1946_v24 = vpop.permute.xlu1 %1159 }
 0x1ba   : > { %1084 = vrot.lane.b32.xlu0 %v1073_v31, %s1513_s22 }
 0x1bb   : > { %1110 = vrot.lane.b32.xlu1 %v1101_v47, %s1512_s21 }
 0x1be   : > { %994 = vrot.lane.b32.xlu0 %v983_v36, %s1509_s18 }
 0x1bf   : > { %1114 = vrot.lane.b32.xlu1 %v1103_v8, %s1512_s21 }
 0x1c2   : > { %1024 = vrot.lane.b32.xlu0 %v1013_v38, %s1510_s19 }
 0x1c3   : > { %1142 = vrot.lane.b32.xlu1 %v1132_v9, %s1514_s23 }
 0x1c6   : > { %1054 = vrot.lane.b32.xlu0 %v1043_v44, %s1511_s20 }
 0x1c7   : > { %1144 = vrot.lane.b32.xlu1 %v1133_v10, %s1514_s23 }
 0x1ca   : > { %1082 = vrot.lane.b32.xlu0 %v1072_v11, %s1513_s22 }
 0x1ce   : > { %1112 = vrot.lane.b32.xlu0 %v1102_v12, %s1512_s21 }
 0x1d2   : > { %1138 = vrot.lane.b32.xlu0 %v1130_v7, %s1514_s23 }
 0x1d6   : > { %1169 = vperm.xlu0 %1477, %v1166_v29  }
 0x201   : > { %v939_v15 = vpop.permute.xlu1 %938 }
 0x205   : > { %v941_v28 = vpop.permute.xlu0 %940  ;;  %v937_v45 = vpop.permute.xlu1 %936 }
 0x206   : > { %v944_v39 = vsel %vm942_vm11, %v939_v15, %v941_v28  ;;  %v943_v55 = vsel %vm942_vm11, %v937_v45, %v939_v15  ;;  %v950_v56 = vadd.f32 %v941_v28, %v922_v43 }
 0x207   : > { %v949_v41 = vadd.f32 %v944_v39, %v921_v40  ;;  %v948_v23 = vadd.f32 %v943_v55, %v920_v6 }
 0x209   : > { %v964_v16 = vpop.permute.xlu0 %963  ;;  %v966_v19 = vpop.permute.xlu1 %965 }
 0x20a   : > { %v969_v30 = vsel %vm967_vm12, %v964_v16, %v966_v19  ;;  %v975_v1 = vadd.f32 %v966_v19, %v950_v56 }
 0x20b   : > { %v974_v59 = vadd.f32 %v969_v30, %v949_v41 }
 0x20d   : > { %v991_v42 = vpop.permute.xlu1 %990  ;;  %v962_v25 = vpop.permute.xlu0 %961 }
 0x20e   : > { %v968_v17 = vsel %vm967_vm12, %v962_v25, %v964_v16 }
 0x20f   : > { %v973_v2 = vadd.f32 %v968_v17, %v948_v23 }
 0x211   : > { %v989_v50 = vpop.permute.xlu1 %988  ;;  %v993_v26 = vpop.permute.xlu0 %992 }
 0x212   : > { %v998_v57 = vsel %vm996_vm13, %v991_v42, %v993_v26  ;;  %v997_v60 = vsel %vm996_vm13, %v989_v50, %v991_v42 }
 0x213   : > { %v1004_v62 = vadd.f32 %v998_v57, %v974_v59  ;;  %v1003_v31 = vadd.f32 %v997_v60, %v973_v2 }
 0x215   : > { %v1021_v49 = vpop.permute.xlu1 %1020  ;;  %v1023_v48 = vpop.permute.xlu0 %1022 }
 0x216   : > { %v1028_v18 = vsel %vm1026_vm14, %v1021_v49, %v1023_v48 }
 0x217   : > { %v1034_v47 = vadd.f32 %v1028_v18, %v1004_v62 }
 0x219   : > { %v1019_v27 = vpop.permute.xlu1 %1018  ;;  %v1053_v20 = vpop.permute.xlu0 %1052 }
 0x21a   : > { %v1027_v52 = vsel %vm1026_vm14, %v1019_v27, %v1021_v49 }
 0x21b   : > { %v1033_v10 = vadd.f32 %v1027_v52, %v1003_v31 }
 0x21d   : > { %v1051_v21 = vpop.permute.xlu1 %1050 }
 0x21e   : > { %v1058_v3 = vsel %vm1056_vm15, %v1051_v21, %v1053_v20 }
 0x21f   : > { %v1064_v11 = vadd.f32 %v1058_v3, %v1034_v47 }
 0x221   : > { %v1049_v22 = vpop.permute.xlu1 %1048 }
 0x222   : > { %v1057_v38 = vsel %vm1056_vm15, %v1049_v22, %v1051_v21 }
 0x223   : > { %v1063_v29 = vadd.f32 %v1057_v38, %v1033_v10 }
 0x224   : > { %v1109_v32 = vpop.permute.xlu0 %1108 }
 0x225   : > { %v1081_v51 = vpop.permute.xlu1 %1080 }
 0x228   : > { %v1948_v33 = vpop.permute.xlu0 %1140 }
 0x229   : > { %v1079_v14 = vpop.permute.xlu1 %1078 }
 0x22a   : > { %v1087_v7 = vsel %vm1086_vm2, %v1079_v14, %v1081_v51 }
 0x22b   : > { %v1093_v25 = vadd.f32 %v1087_v7, %v1063_v29 }
 0x22c   : > { %v1085_v5 = vpop.permute.xlu0 %1084 }
 0x22d   : > { %v1111_v35 = vpop.permute.xlu1 %1110 }
 0x22e   : > { %v1117_v16 = vsel %vm1116_vm3, %v1109_v32, %v1111_v35 }
 0x230   : > { %v995_v37 = vpop.permute.xlu0 %994 }
 0x231   : > { %v1115_v46 = vpop.permute.xlu1 %1114  ;;  %v999_v58 = vsel %vm996_vm13, %v993_v26, %v995_v37 }
 0x232   : > { %v1005_v63 = vadd.f32 %v999_v58, %v975_v1 }
 0x234   : > { %v1025_v54 = vpop.permute.xlu0 %1024 }
 0x235   : > { %v1029_v61 = vsel %vm1026_vm14, %v1023_v48, %v1025_v54  ;;  %v1143_v34 = vpop.permute.xlu1 %1142  ;;  %v1123_v48 = vadd.f32 %v1117_v16, %v1093_v25 }
 0x236   : > { %v1035_v36 = vadd.f32 %v1029_v61, %v1005_v63  ;;  %v1148_v49 = vsel %vm1146_vm4, %v1948_v33, %v1143_v34 }
 0x238   : > { %v1055_v4 = vpop.permute.xlu0 %1054 }
 0x239   : > { %v1059_v53 = vsel %vm1056_vm15, %v1053_v20, %v1055_v4  ;;  %v1145_v13 = vpop.permute.xlu1 %1144 }
 0x23a   : > { %v1065_v12 = vadd.f32 %v1059_v53, %v1035_v36  ;;  %v1149_v27 = vsel %vm1146_vm4, %v1143_v34, %v1145_v13 }
 0x23c   : > { %v1083_v8 = vpop.permute.xlu0 %1082 }
 0x23d   : > { %v1088_v9 = vsel %vm1086_vm2, %v1081_v51, %v1083_v8  ;;  %v1089_v44 = vsel %vm1086_vm2, %v1083_v8, %v1085_v5 }
 0x23e   : > { %v1094_v15 = vadd.f32 %v1088_v9, %v1064_v11  ;;  %v1095_v28 = vadd.f32 %v1089_v44, %v1065_v12 }
 0x240   : > { %v1113_v45 = vpop.permute.xlu0 %1112 }
 0x241   : > { %v1118_v19 = vsel %vm1116_vm3, %v1111_v35, %v1113_v45  ;;  %v1119_v42 = vsel %vm1116_vm3, %v1113_v45, %v1115_v46  ;;  %v1165_v35 = vld [vmem:[%s1993_s7] sm:$0xff] }
 0x242   : > { %v1124_v50 = vadd.f32 %v1118_v19, %v1094_v15  ;;  %v1125_v26 = vadd.f32 %v1119_v42, %v1095_v28 }
 0x244   : > { %v1154_v21 = vadd.f32 %v1148_v49, %v1124_v50  ;;  %v1155_v20 = vadd.f32 %v1149_v27, %v1125_v26  ;;  %v1139_v22 = vpop.permute.xlu0 %1138 }
 0x245   : > { %v1147_v51 = vsel %vm1146_vm4, %v1139_v22, %v1948_v33 }
 0x246   : > { %v1163_v32 = vadd.f32 %v1946_v24, %v1154_v21  ;;  %v1164_v14 = vadd.f32 %v1946_v24, %v1155_v20  ;;  %v1153_v5 = vadd.f32 %v1147_v51, %v1123_v48 }
 0x248   : > { %v1162_v37 = vadd.f32 %v1946_v24, %v1153_v5  ;;  %1401 = vmatprep.subr.msk.mxu1 %vm352_vm0, %v1163_v32  ;;  %1418 = vmatpush3.msk.msra.mxu0 %vm352_vm0, %v1164_v14 }
 0x249   : > { %1420 = vmatmul.mubr.msk.f32.vlgmr.msra.gmra.mxu0 %vm348_vm1, %v1165_v35 }
 0x24a   : > { %1402 = vmatpush1.msk.msra.mxu1 %vm352_vm0, %v1162_v37 }
 0x24b   : > { %1403 = vmatmul.mubr.msk.f32.vlgmr.msra.gmra.mxu1 %vm348_vm1, %v1165_v35 }
 0x251   : > { %v1170_v33 = vpop.permute.xlu0 %1169 }
 0x309   : > { %v1321_v39 = vpop.f32.mrf.mxu0 }
 0x30a   : > { %v1322_v24 = vadd.f32 %v1321_v39, %v1170_v33 }
 0x30b   : > { %v1250_v40 = vpop.f32.mrf.mxu1  ;;  %v1421_v43 = vpop.f32.mrf.mxu0 }
 0x30c   : > { %v1251_v46 = vadd.f32 %v1250_v40, %v1170_v33  ;;  %1328 = vst.msk [vmem:[%s332_s12 + $0x10] sm:$0xff] %vm1327_vm5, %v1322_v24 }
 0x30d   : > { %1330 = vst.msk [vmem:[%s332_s12 + $0x10] sm:$0xff] %vm1329_vm6, %v1488_v0  ;;  %v1252_v54 = vpop.f32.mrf.mxu1 }
 0x30e   : > { %1325 = vst [vmem:[%s332_s12] sm:$0xff] %v1251_v46  ;;  %v1253_v55 = vadd.f32 %v1252_v54, %v1170_v33 }
 0x310   : > { %1326 = vst [vmem:[%s332_s12 + $0x8] sm:$0xff] %v1253_v55 }
 0x311 PF: > { %s19_s30 = sadd.s32 1, %s1486_s30  }
 0x312   : > { %p16_p4 = scmp.ge.s32.totalorder %s19_s30, 4  }
 0x314   :  { %18 = sbr.rel (!%p16_p4) target bundleno = 1 (0x1), region = 86 }

</bundles_post_ra>
